<compile_context>
chip_gen: v5e
topology: v5e:2x2
jax: 0.10.0
libtpu: 0.0.40
codegen_flags: <defaults>
</compile_context>

<pallas_src>
import jax
import jax.numpy as jnp
from jax import lax
from jax.experimental import pallas as pl
from jax.experimental.pallas import tpu as pltpu


def _round_up(n, m):
    return ((n + m - 1) // m) * m


def _two_lin_kernel(x_ref, wa_ref, wb_ref, a_ref, b_ref):
    # x: (TB, in_f); wa: (out_a, in_f); wb: (out_b, in_f)  (torch Linear layout)
    # Contract x's dim 1 against each weight's dim 1 (== x @ W.T) with f32
    # accumulation on the MXU, and store each result straight to its output.
    x = x_ref[...]
    dims = (((1,), (1,)), ((), ()))
    a_ref[...] = lax.dot_general(
        x, wa_ref[...], dimension_numbers=dims,
        preferred_element_type=jnp.float32).astype(a_ref.dtype)
    b_ref[...] = lax.dot_general(
        x, wb_ref[...], dimension_numbers=dims,
        preferred_element_type=jnp.float32).astype(b_ref.dtype)


def two_lin_layer_net(x, wa, wb, *, batch_tile=8192, force_pallas=False):
    """Forward of TwoLinLayerNet.

    Args:
      x:  (batch, 10) float32
      wa: (10, 10) float32   -- torch Linear weight layout (out, in)
      wb: (1, 10)  float32   -- torch Linear weight layout (out, in)
    Returns:
      (a, b) with a: (batch, 10), b: (batch, 1)
    """
    batch, in_f = x.shape
    out_a = wa.shape[0]
    out_b = wb.shape[0]

    # Tiny batches: fixed kernel-launch + pipeline-prologue cost dominates; a
    # plain XLA matmul is strictly better.
    if batch < 512 and not force_pallas:
        return x @ wa.T, x @ wb.T

    # --- batch-tile selection -------------------------------------------------
    if batch >= 2 * batch_tile:
        block_b = batch_tile
    elif batch > 1024:
        # Mid-size: at least 2 grid steps so v7x's two TensorCores shard work;
        # keep the block sublane-aligned (multiple of 8).
        block_b = _round_up(pl.cdiv(batch, 2), 8)
    else:
        block_b = batch  # single full-extent block (always (8,128)-legal)
    grid = (pl.cdiv(batch, block_b),)

    # --- VMEM budget from PADDED (8,128) block sizes ----------------------------
    def padded_bytes(rows, cols):
        return _round_up(rows, 8) * _round_up(cols, 128) * 4  # f32

    block_bytes = 2 * (padded_bytes(block_b, in_f)       # x   (double-buffered)
                       + padded_bytes(block_b, out_a)    # a
                       + padded_bytes(block_b, out_b))   # b
    weight_bytes = 2 * (padded_bytes(out_a, in_f) + padded_bytes(out_b, in_f))
    vmem_limit = min(max(block_bytes + weight_bytes + (4 << 20), 32 << 20),
                     60 << 20)  # never exceed v7x's 64 MiB per-TC VMEM

    cost = pl.CostEstimate(
        flops=2 * batch * in_f * (out_a + out_b),
        transcendentals=0,
        bytes_accessed=(batch * in_f
                        + batch * (out_a + out_b)
                        + (out_a + out_b) * in_f) * 4,
    )

    a, b = pl.pallas_call(
        _two_lin_kernel,
        out_shape=(jax.ShapeDtypeStruct((batch, out_a), x.dtype),
                   jax.ShapeDtypeStruct((batch, out_b), x.dtype)),
        grid=grid,
        in_specs=[
            pl.BlockSpec((block_b, in_f), lambda i: (i, 0)),
            pl.BlockSpec((out_a, in_f), lambda i: (0, 0)),   # VMEM-resident
            pl.BlockSpec((out_b, in_f), lambda i: (0, 0)),   # VMEM-resident
        ],
        out_specs=(
            pl.BlockSpec((block_b, out_a), lambda i: (i, 0)),
            pl.BlockSpec((block_b, out_b), lambda i: (i, 0)),
        ),
        compiler_params=pltpu.CompilerParams(
            dimension_semantics=("parallel",),   # megacore sharding on v7x
            vmem_limit_bytes=vmem_limit,
        ),
        cost_estimate=cost,
    )(x, wa, wb)
    return a, b


if __name__ == "__main__":
    key = jax.random.PRNGKey(0)
    kwa, kwb, k1, k2, k3 = jax.random.split(key, 5)

    in_features = 10

    # Deterministic synthetic parameters (torch Linear weight shape: (out, in)).
    wa = jax.random.normal(kwa, (10, in_features), dtype=jnp.float32) * 0.1
    wb = jax.random.normal(kwb, (1, in_features), dtype=jnp.float32) * 0.1

    def check(x, a, b):
        ok = a.shape == (x.shape[0], 10) and b.shape == (x.shape[0], 1)
        ok &= bool(jnp.allclose(a, x @ wa.T, atol=1e-5, rtol=1e-5))
        ok &= bool(jnp.allclose(b, x @ wb.T, atol=1e-5, rtol=1e-5))
        return ok

    ok = True

    # 1) Tiny batch forced through the Pallas path (single full-extent block).
    x1 = jax.random.normal(k1, (8, in_features), dtype=jnp.float32)
    a1, b1 = two_lin_layer_net(x1, wa, wb, force_pallas=True)
    jax.block_until_ready((a1, b1))
    ok &= check(x1, a1, b1)

    # 2) Tiny batch via the non-Pallas small-batch fallback (semantics check).
    a1f, b1f = two_lin_layer_net(x1, wa, wb)
    jax.block_until_ready((a1f, b1f))
    ok &= check(x1, a1f, b1f)

    # 3) Mid-size batch: split into 2 grid steps of 520 rows (megacore path).
    x2 = jax.random.normal(k2, (1040, in_features), dtype=jnp.float32)
    a2, b2 = two_lin_layer_net(x2, wa, wb)
    jax.block_until_ready((a2, b2))
    ok &= check(x2, a2, b2)

    # 4) Large batch: full 8192-row tiles plus a partial tail tile.
    x3 = jax.random.normal(k3, (20000, in_features), dtype=jnp.float32)
    a3, b3 = two_lin_layer_net(x3, wa, wb)
    jax.block_until_ready((a3, b3))
    ok &= check(x3, a3, b3)

    assert ok
    print("KERNEL_OK")
</pallas_src>

<mosaic_0001>
module attributes {stable_mosaic.version = 11 : i64} {
  func.func @_two_lin_kernel(%arg0: i32, %arg1: memref<8x10xf32, #tpu.memory_space<vmem>>, %arg2: memref<10x10xf32, #tpu.memory_space<vmem>>, %arg3: memref<1x10xf32, #tpu.memory_space<vmem>>, %arg4: memref<8x10xf32, #tpu.memory_space<vmem>>, %arg5: memref<8x1xf32, #tpu.memory_space<vmem>>) attributes {dimension_semantics = [#tpu.dimension_semantics<parallel>], iteration_bounds = array<i64: 1>, scalar_prefetch = 0 : i64, scratch_operands = 0 : i64, tpu.core_type = #tpu.core_type<tc>, window_params = [{transform_indices = @transform_0, window_bounds = array<i64: 8, 10>}, {pipeline_mode = #tpu.pipeline_mode<synchronous>, transform_indices = @transform_1, window_bounds = array<i64: 10, 10>}, {pipeline_mode = #tpu.pipeline_mode<synchronous>, transform_indices = @transform_2, window_bounds = array<i64: 1, 10>}, {transform_indices = @transform_3, window_bounds = array<i64: 8, 10>}, {transform_indices = @transform_4, window_bounds = array<i64: 8, 1>}]} {
    %c0 = arith.constant 0 : index
    %c0_0 = arith.constant 0 : index
    %0 = vector.load %arg1[%c0, %c0_0] : memref<8x10xf32, #tpu.memory_space<vmem>>, vector<8x10xf32>
    %c0_1 = arith.constant 0 : index
    %c0_2 = arith.constant 0 : index
    %1 = vector.load %arg2[%c0_1, %c0_2] : memref<10x10xf32, #tpu.memory_space<vmem>>, vector<10x10xf32>
    %cst = arith.constant dense<0.000000e+00> : vector<8x10xf32>
    %2 = tpu.matmul %0, %1, %cst {dimension_numbers = #tpu.dot_dimension_numbers<[1], [1], [0], [0], [0, 0, 1, 0], [], []>} : vector<8x10xf32>, vector<10x10xf32>, vector<8x10xf32> -> vector<8x10xf32>
    %c0_3 = arith.constant 0 : index
    %c0_4 = arith.constant 0 : index
    %3 = vector.load %arg4[%c0_3, %c0_4] : memref<8x10xf32, #tpu.memory_space<vmem>>, vector<8x10xf32>
    tpu.vector_store %arg4[%c0_3, %c0_4], %2 {strides = array<i32>} : memref<8x10xf32, #tpu.memory_space<vmem>>, vector<8x10xf32>,
    %c0_5 = arith.constant 0 : index
    %c0_6 = arith.constant 0 : index
    %4 = vector.load %arg3[%c0_5, %c0_6] : memref<1x10xf32, #tpu.memory_space<vmem>>, vector<1x10xf32>
    %cst_7 = arith.constant dense<0.000000e+00> : vector<8x1xf32>
    %5 = tpu.matmul %0, %4, %cst_7 {dimension_numbers = #tpu.dot_dimension_numbers<[1], [1], [0], [0], [0, 0, 1, 0], [], []>} : vector<8x10xf32>, vector<1x10xf32>, vector<8x1xf32> -> vector<8x1xf32>
    %c0_8 = arith.constant 0 : index
    %c0_9 = arith.constant 0 : index
    %6 = vector.load %arg5[%c0_8, %c0_9] : memref<8x1xf32, #tpu.memory_space<vmem>>, vector<8x1xf32>
    tpu.vector_store %arg5[%c0_8, %c0_9], %5 {strides = array<i32>} : memref<8x1xf32, #tpu.memory_space<vmem>>, vector<8x1xf32>,
    return
  }
  func.func @transform_0(%arg0: i32) -> (i32, i32) {
    %c0_i32 = arith.constant 0 : i32
    %c0_i32_0 = arith.constant 0 : i32
    return %arg0, %c0_i32 : i32, i32
  }
  func.func @transform_1(%arg0: i32) -> (i32, i32) {
    %c0_i32 = arith.constant 0 : i32
    %c0_i32_0 = arith.constant 0 : i32
    %c0_i32_1 = arith.constant 0 : i32
    return %c0_i32, %c0_i32_0 : i32, i32
  }
  func.func @transform_2(%arg0: i32) -> (i32, i32) {
    %c0_i32 = arith.constant 0 : i32
    %c0_i32_0 = arith.constant 0 : i32
    %c0_i32_1 = arith.constant 0 : i32
    return %c0_i32, %c0_i32_0 : i32, i32
  }
  func.func @transform_3(%arg0: i32) -> (i32, i32) {
    %c0_i32 = arith.constant 0 : i32
    %c0_i32_0 = arith.constant 0 : i32
    return %arg0, %c0_i32 : i32, i32
  }
  func.func @transform_4(%arg0: i32) -> (i32, i32) {
    %c0_i32 = arith.constant 0 : i32
    %c0_i32_0 = arith.constant 0 : i32
    return %arg0, %c0_i32 : i32, i32
  }
}

</mosaic_0001>

<bundles_post_ra>
// kernel: tpu_custom_call.1
= control target key start
LH: loop header
LB: loop body
LE: loop exit
PB: predicated region body
PF: predicated region fallthrough
CT: control target
= control target key end

     0   :  { %10 = vsyncpa [#allocation3], 0  ;;  %s250_s0 = inlined_call_operand.hbm [shape: f32[8,10], index: 0, kind: input, shape index: {}]   ;;  %s251_s1 = inlined_call_operand.hbm [shape: f32[10,10], index: 1, kind: input, shape index: {}]   ;;  %s252_s2 = inlined_call_operand.vmem [shape: f32[1,10], index: 2, kind: input, shape index: {}]   ;;  %s253_s3 = inlined_call_operand.hbm [shape: f32[8,10], index: 3, kind: output, shape index: {0}]   ;;  %s254_s4 = inlined_call_operand.vmem [shape: f32[8,1], index: 4, kind: output, shape index: {1}]  }
   0x1   :  { %11 = vsyncpa [#allocation6], 0 }
   0x2   :  { %12 = vsyncpa [#allocation4], 0  ;;  %s18_s17 = sshll.u32 %s250_s0, 4  ;;  %s200_s18 = smov [#allocation2]   ;;  %s19_s17 = int_to_ptr.hbm [resolvable:$true] %s18_s17 }
   0x3   :  { %s20_s19 = sshll.u32 %s200_s18, 4  ;;  %s28_s22 = sshll.u32 %s251_s1, 4  ;;  %s21_s19 = int_to_ptr.vmem [resolvable:$true] %s20_s19  ;;  %s29_s22 = int_to_ptr.hbm [resolvable:$true] %s28_s22 }
   0x4   :  { %23 = dma.hbm_to_vmem [thread:$0]  %s19_s17, 128, %s21_s19, [#allocation3]  }
   0x5   :  { %s201_s23 = smov [#allocation5]   ;;  %s202_s25 = smov 128  }
   0x6   :  { %s30_s24 = sshll.u32 %s201_s23, 4  ;;  %s203_s26 = smov 8   ;;  %s31_s24 = int_to_ptr.vmem [resolvable:$true] %s30_s24 }
   0x7   :  { %36 = dma.hbm_to_vmem [thread:$0]  %s29_s22, 256, %s31_s24, [#allocation6], %s202_s25, %s202_s25, %s203_s26  }
   0x8   :  { %194 = dma.done.wait [#allocation3], 128  }
   0x9   :  { %195 = vsyncadd [#allocation3], 4294967168 }
   0xa   :  { %196 = dma.done.wait [#allocation6], 256  }
   0xb   :  { %197 = vsyncadd [#allocation6], 4294967040  ;;  %vm50_vm0 = vcmask 80896   ;;  %v49_v0 = vld [vmem:[#allocation5 + $0x8] sm:$0x3]  ;;  %v48_v2 = vld [vmem:[#allocation5] sm:$0xff] }
   0xc   :  { %113 = vmatpush.xpose.msk.msra.mxu0 %vm50_vm0, %v49_v0  ;;  %v121_v1 = vld [vmem:[%s252_s2] ss:$0 sm:$0xff]  ;;  %vm89_vm1 = vcmask 7168   ;;  %s204_s29 = smov [#allocation7]   ;;  %s98_s6 = sshll.u32 %s253_s3, 4  ;;  %s99_s6 = int_to_ptr.hbm [resolvable:$true] %s98_s6 }
   0xd   :  { %v47_v3 = vld [vmem:[#allocation2] sm:$0xff]  ;;  %s96_s30 = sshll.u32 %s204_s29, 4  ;;  %s97_s30 = int_to_ptr.vmem [resolvable:$true] %s96_s30 }
   0xe   :  { %v85_v4 = vmul.f32 %v121_v1, %v47_v3 }
  0x10   :  { %114 = vmatpush.xpose.msk.msra.mxu0 %vm50_vm0, %v48_v2  ;;  %v86_v5 = vsel %vm50_vm0, %v85_v4, 0.0 }
  0x11   :  { %87 = vadd.xlane.f32.xlu0 %v86_v5 }
  0x13   :  { %115 = vmatmul.msk.f32.vlgmr.msra.gmra.mxu0 %vm50_vm0, %v47_v3 }
  0x84   :  { %v88_v6 = vpop.xlane.xlu0 %87 }
  0x85   :  { %90 = vst.msk [vmem:[%s254_s4] sm:$0xff] %vm89_vm1, %v88_v6 }
  0x90   :  { %v77_v7 = vpop.f32.mrf.mxu0 }
  0x91   :  { %80 = vst.msk [vmem:[#allocation7] sm:$0xff] %vm50_vm0, %v77_v7 }
  0x92   :  { %101 = dma.vmem_to_hbm [thread:$0]  %s97_s30, 128, %s99_s6, [#allocation4]  }
  0x93   :  { %198 = dma.done.wait [#allocation4], 128  }
  0x94   :  { %199 = vsyncadd [#allocation4], 4294967168 }
  0x95   :  { %110 = vsyncpa [#allocation3], 1 }
  0x96   :  { %111 = vsyncpa [#allocation6], 1 }
  0x97   :  { %112 = vsyncpa [#allocation4], 1 }

</bundles_post_ra>
